<compile_context>
chip_gen: v6e
topology: v6e:2x2x1
jax: 0.10.0
libtpu: 0.0.40
codegen_flags: <defaults>
</compile_context>

<pallas_src>
import jax
import jax.numpy as jnp
from jax.experimental import pallas as pl
from jax.experimental.pallas import tpu as pltpu

_LANE = 128
_SUBLANE = 8
_MAX_TILE_SUBLANES = 1024  # f32 worst case: 3 inputs * 2 bufs * 1024*128*4B = 3 MiB


def _wiou_kernel(flag_ref, pred_ref, targ_ref, w_ref, inter_ref, sum_ref):
    """One (batch, hw-tile) grid step.

    pred/targ/w blocks: (1, tile_s, 128), native dtype.
    inter_ref / sum_ref: per-batch, per-lane f32 partial sums of shape
    (1, 1, 128), resident across the hw-tile axis (accumulator pattern).
    """
    s = pl.program_id(1)

    @pl.when(s == 0)
    def _():
        inter_ref[...] = jnp.zeros_like(inter_ref)
        sum_ref[...] = jnp.zeros_like(sum_ref)

    p = pred_ref[...].astype(jnp.float32)   # (1, tile_s, 128)
    t = targ_ref[...].astype(jnp.float32)
    w = w_ref[...].astype(jnp.float32)

    # Global sigmoid predicate from the wrapper (SMEM scalar). The sigmoid
    # itself is EUP work — free filler in this HBM-bound kernel.
    apply_sigmoid = flag_ref[0] != 0
    p = jnp.where(apply_sigmoid, jax.nn.sigmoid(p), p)

    # Weighted terms computed once (saves a mul + add per element).
    pw = p * w
    tw = t * w
    inter_ref[...] += jnp.sum(pw * t, axis=1, keepdims=True)    # Σ p*t*w
    sum_ref[...] += jnp.sum(pw + tw, axis=1, keepdims=True)     # Σ (p+t)*w


def _round_up(x, m):
    return (x + m - 1) // m * m


def weighted_iou_loss(predictions, targets, importance_weights, *, smooth=1e-6):
    """predictions/targets/importance_weights: [B, 1, H, W] -> scalar f32 loss."""
    if importance_weights is None:
        # TODO(synk): distance_transform_edt-based default beta weights not implemented.
        raise NotImplementedError("importance_weights must be provided")

    B, C, H, W = predictions.shape
    assert C == 1, "WeightedIoULoss expects single-channel masks"
    hw = H * W

    # Global (whole-tensor) sigmoid predicate — must NOT be computed per tile.
    apply_sig = jnp.logical_or(jnp.max(predictions) > 1.0,
                               jnp.min(predictions) < 0.0)
    flag = apply_sig.astype(jnp.int32).reshape(1)

    # Lane/sublane-dense slabs: (B, S, 128), S a multiple of 8, tiled by tile_s.
    hw_aligned = _round_up(hw, _LANE * _SUBLANE)
    s_total = hw_aligned // _LANE
    tile_s = min(_MAX_TILE_SUBLANES, s_total)
    s_total = _round_up(s_total, tile_s)
    hw_pad = s_total * _LANE
    num_tiles = s_total // tile_s
    pad = hw_pad - hw

    def prep(x):
        x = x.reshape(B, hw)            # keep native dtype (bf16 stays bf16)
        if pad:
            x = jnp.pad(x, ((0, 0), (0, pad)))   # zero weights/targets => no contribution
        return x.reshape(B, s_total, _LANE)

    pred3 = prep(predictions)
    targ3 = prep(targets)
    w3 = prep(importance_weights)

    grid_spec = pltpu.PrefetchScalarGridSpec(
        num_scalar_prefetch=1,
        grid=(B, num_tiles),
        in_specs=[
            pl.BlockSpec((1, tile_s, _LANE), lambda b, s, flag: (b, s, 0)),
            pl.BlockSpec((1, tile_s, _LANE), lambda b, s, flag: (b, s, 0)),
            pl.BlockSpec((1, tile_s, _LANE), lambda b, s, flag: (b, s, 0)),
        ],
        out_specs=[
            pl.BlockSpec((1, 1, _LANE), lambda b, s, flag: (b, 0, 0)),
            pl.BlockSpec((1, 1, _LANE), lambda b, s, flag: (b, 0, 0)),
        ],
    )

    inter_p, sum_p = pl.pallas_call(
        _wiou_kernel,
        grid_spec=grid_spec,
        out_shape=(
            jax.ShapeDtypeStruct((B, 1, _LANE), jnp.float32),
            jax.ShapeDtypeStruct((B, 1, _LANE), jnp.float32),
        ),
        compiler_params=pltpu.CompilerParams(
            dimension_semantics=("parallel", "arbitrary")),
    )(flag, pred3, targ3, w3)

    # Tiny XLA epilogue: reduce lane partials, then 1 - mean(iou).
    inter = jnp.sum(inter_p.reshape(B, _LANE), axis=-1)
    total = jnp.sum(sum_p.reshape(B, _LANE), axis=-1)
    union = total - inter
    iou = (inter + smooth) / (union + smooth)
    return (1.0 - jnp.mean(iou)).astype(jnp.float32)


def _reference_loss(predictions, targets, importance_weights, smooth=1e-6):
    """Pure-JAX reference mirroring the PyTorch forward (for sanity check)."""
    p = predictions
    apply_sig = jnp.logical_or(jnp.max(p) > 1.0, jnp.min(p) < 0.0)
    p = jnp.where(apply_sig, jax.nn.sigmoid(p), p)
    inter = jnp.sum(p * targets * importance_weights, axis=(2, 3))
    union = jnp.sum((p + targets) * importance_weights, axis=(2, 3)) - inter
    iou = (inter + smooth) / (union + smooth)
    return 1.0 - jnp.mean(iou)


if __name__ == "__main__":
    key = jax.random.PRNGKey(0)
    k1, k2, k3 = jax.random.split(key, 3)

    B, C, H, W = 2, 1, 16, 16
    # Raw logits (outside [0,1]) -> sigmoid path exercised, as in PyTorch.
    predictions = jax.random.normal(k1, (B, C, H, W), dtype=jnp.float32) * 2.0
    # Binary ground-truth masks.
    targets = (jax.random.uniform(k2, (B, C, H, W)) > 0.5).astype(jnp.float32)
    # Deterministic synthetic beta weights in [1, 2] (stand-in for the
    # distance-transform weights of compute_distance_weights).
    importance_weights = 1.0 + jax.random.uniform(k3, (B, C, H, W), dtype=jnp.float32)

    loss = jax.block_until_ready(
        weighted_iou_loss(predictions, targets, importance_weights))
    ref = _reference_loss(predictions, targets, importance_weights)
    assert jnp.allclose(loss, ref, rtol=1e-5, atol=1e-6), (loss, ref)

    # Native-bf16 path: half the HBM bytes, f32 cast happens inside the kernel.
    pred_bf = predictions.astype(jnp.bfloat16)
    targ_bf = targets.astype(jnp.bfloat16)
    w_bf = importance_weights.astype(jnp.bfloat16)
    loss_bf = jax.block_until_ready(weighted_iou_loss(pred_bf, targ_bf, w_bf))
    ref_bf = _reference_loss(pred_bf.astype(jnp.float32),
                             targ_bf.astype(jnp.float32),
                             w_bf.astype(jnp.float32))
    assert jnp.allclose(loss_bf, ref_bf, rtol=1e-4, atol=1e-5), (loss_bf, ref_bf)

    print("KERNEL_OK")
</pallas_src>

<mosaic_0001>
module attributes {stable_mosaic.version = 11 : i64} {
  func.func @_wiou_kernel(%arg0: i32, %arg1: i32, %arg2: memref<1xi32, #tpu.memory_space<smem>>, %arg3: memref<1x8x128xf32, #tpu.memory_space<vmem>>, %arg4: memref<1x8x128xf32, #tpu.memory_space<vmem>>, %arg5: memref<1x8x128xf32, #tpu.memory_space<vmem>>, %arg6: memref<1x1x128xf32, #tpu.memory_space<vmem>>, %arg7: memref<1x1x128xf32, #tpu.memory_space<vmem>>) attributes {dimension_semantics = [#tpu.dimension_semantics<parallel>, #tpu.dimension_semantics<arbitrary>], iteration_bounds = array<i64: 2, 1>, scalar_prefetch = 1 : i64, scratch_operands = 0 : i64, tpu.core_type = #tpu.core_type<tc>, window_params = [{transform_indices = @transform_0, window_bounds = array<i64: 1, 8, 128>}, {transform_indices = @transform_1, window_bounds = array<i64: 1, 8, 128>}, {transform_indices = @transform_2, window_bounds = array<i64: 1, 8, 128>}, {transform_indices = @transform_3, window_bounds = array<i64: 1, 1, 128>}, {transform_indices = @transform_4, window_bounds = array<i64: 1, 1, 128>}]} {
    %c0_i32 = arith.constant 0 : i32
    %0 = arith.cmpi eq, %arg1, %c0_i32 : i32
    %1 = arith.extui %0 : i1 to i32
    %c0_i32_0 = arith.constant 0 : i32
    %2 = arith.cmpi ne, %1, %c0_i32_0 : i32
    scf.if %2 {
      %cst_25 = arith.constant 0.000000e+00 : f32
      %28 = vector.broadcast %cst_25 : f32 to vector<1x1x128xf32>
      %c0_26 = arith.constant 0 : index
      %c0_27 = arith.constant 0 : index
      %c0_28 = arith.constant 0 : index
      %29 = vector.load %arg6[%c0_26, %c0_27, %c0_28] : memref<1x1x128xf32, #tpu.memory_space<vmem>>, vector<1x1x128xf32>
      tpu.vector_store %arg6[%c0_26, %c0_27, %c0_28], %28 {strides = array<i32>} : memref<1x1x128xf32, #tpu.memory_space<vmem>>, vector<1x1x128xf32>,
      %cst_29 = arith.constant 0.000000e+00 : f32
      %30 = vector.broadcast %cst_29 : f32 to vector<1x1x128xf32>
      %c0_30 = arith.constant 0 : index
      %c0_31 = arith.constant 0 : index
      %c0_32 = arith.constant 0 : index
      %31 = vector.load %arg7[%c0_30, %c0_31, %c0_32] : memref<1x1x128xf32, #tpu.memory_space<vmem>>, vector<1x1x128xf32>
      tpu.vector_store %arg7[%c0_30, %c0_31, %c0_32], %30 {strides = array<i32>} : memref<1x1x128xf32, #tpu.memory_space<vmem>>, vector<1x1x128xf32>,
    } else {
    }
    %c0 = arith.constant 0 : index
    %c0_1 = arith.constant 0 : index
    %c0_2 = arith.constant 0 : index
    %3 = vector.load %arg3[%c0, %c0_1, %c0_2] : memref<1x8x128xf32, #tpu.memory_space<vmem>>, vector<1x8x128xf32>
    %c0_3 = arith.constant 0 : index
    %c0_4 = arith.constant 0 : index
    %c0_5 = arith.constant 0 : index
    %4 = vector.load %arg4[%c0_3, %c0_4, %c0_5] : memref<1x8x128xf32, #tpu.memory_space<vmem>>, vector<1x8x128xf32>
    %c0_6 = arith.constant 0 : index
    %c0_7 = arith.constant 0 : index
    %c0_8 = arith.constant 0 : index
    %5 = vector.load %arg5[%c0_6, %c0_7, %c0_8] : memref<1x8x128xf32, #tpu.memory_space<vmem>>, vector<1x8x128xf32>
    %c0_9 = arith.constant 0 : index
    %6 = memref.load %arg2[%c0_9] : memref<1xi32, #tpu.memory_space<smem>>
    %c0_i32_10 = arith.constant 0 : i32
    %7 = arith.cmpi ne, %6, %c0_i32_10 : i32
    %8 = arith.negf %3 : vector<1x8x128xf32>
    %9 = math.exp %8 : vector<1x8x128xf32>
    %cst = arith.constant 1.000000e+00 : f32
    %10 = vector.broadcast %cst : f32 to vector<1x8x128xf32>
    %11 = arith.addf %10, %9 : vector<1x8x128xf32>
    %12 = arith.divf %10, %11 : vector<1x8x128xf32>
    %13 = arith.select %7, %12, %3 : vector<1x8x128xf32>
    %14 = arith.mulf %13, %5 : vector<1x8x128xf32>
    %15 = arith.mulf %4, %5 : vector<1x8x128xf32>
    %c0_11 = arith.constant 0 : index
    %c0_12 = arith.constant 0 : index
    %c0_13 = arith.constant 0 : index
    %16 = vector.load %arg6[%c0_11, %c0_12, %c0_13] : memref<1x1x128xf32, #tpu.memory_space<vmem>>, vector<1x1x128xf32>
    %17 = arith.mulf %14, %4 : vector<1x8x128xf32>
    %cst_14 = arith.constant dense<0.000000e+00> : vector<1x128xf32>
    %18 = vector.multi_reduction <add>, %17, %cst_14 [1] : vector<1x8x128xf32> to vector<1x128xf32>
    %19 = vector.shape_cast %18 : vector<1x128xf32> to vector<1x1x128xf32>
    %20 = arith.addf %16, %19 : vector<1x1x128xf32>
    %c0_15 = arith.constant 0 : index
    %c0_16 = arith.constant 0 : index
    %c0_17 = arith.constant 0 : index
    %21 = vector.load %arg6[%c0_15, %c0_16, %c0_17] : memref<1x1x128xf32, #tpu.memory_space<vmem>>, vector<1x1x128xf32>
    tpu.vector_store %arg6[%c0_15, %c0_16, %c0_17], %20 {strides = array<i32>} : memref<1x1x128xf32, #tpu.memory_space<vmem>>, vector<1x1x128xf32>,
    %c0_18 = arith.constant 0 : index
    %c0_19 = arith.constant 0 : index
    %c0_20 = arith.constant 0 : index
    %22 = vector.load %arg7[%c0_18, %c0_19, %c0_20] : memref<1x1x128xf32, #tpu.memory_space<vmem>>, vector<1x1x128xf32>
    %23 = arith.addf %14, %15 : vector<1x8x128xf32>
    %cst_21 = arith.constant dense<0.000000e+00> : vector<1x128xf32>
    %24 = vector.multi_reduction <add>, %23, %cst_21 [1] : vector<1x8x128xf32> to vector<1x128xf32>
    %25 = vector.shape_cast %24 : vector<1x128xf32> to vector<1x1x128xf32>
    %26 = arith.addf %22, %25 : vector<1x1x128xf32>
    %c0_22 = arith.constant 0 : index
    %c0_23 = arith.constant 0 : index
    %c0_24 = arith.constant 0 : index
    %27 = vector.load %arg7[%c0_22, %c0_23, %c0_24] : memref<1x1x128xf32, #tpu.memory_space<vmem>>, vector<1x1x128xf32>
    tpu.vector_store %arg7[%c0_22, %c0_23, %c0_24], %26 {strides = array<i32>} : memref<1x1x128xf32, #tpu.memory_space<vmem>>, vector<1x1x128xf32>,
    return
  }
  func.func @transform_0(%arg0: i32, %arg1: i32, %arg2: memref<1xi32, #tpu.memory_space<smem>>) -> (i32, i32, i32) {
    %c0_i32 = arith.constant 0 : i32
    %c0_i32_0 = arith.constant 0 : i32
    return %arg0, %arg1, %c0_i32 : i32, i32, i32
  }
  func.func @transform_1(%arg0: i32, %arg1: i32, %arg2: memref<1xi32, #tpu.memory_space<smem>>) -> (i32, i32, i32) {
    %c0_i32 = arith.constant 0 : i32
    %c0_i32_0 = arith.constant 0 : i32
    return %arg0, %arg1, %c0_i32 : i32, i32, i32
  }
  func.func @transform_2(%arg0: i32, %arg1: i32, %arg2: memref<1xi32, #tpu.memory_space<smem>>) -> (i32, i32, i32) {
    %c0_i32 = arith.constant 0 : i32
    %c0_i32_0 = arith.constant 0 : i32
    return %arg0, %arg1, %c0_i32 : i32, i32, i32
  }
  func.func @transform_3(%arg0: i32, %arg1: i32, %arg2: memref<1xi32, #tpu.memory_space<smem>>) -> (i32, i32, i32) {
    %c0_i32 = arith.constant 0 : i32
    %c0_i32_0 = arith.constant 0 : i32
    %c0_i32_1 = arith.constant 0 : i32
    return %arg0, %c0_i32, %c0_i32_0 : i32, i32, i32
  }
  func.func @transform_4(%arg0: i32, %arg1: i32, %arg2: memref<1xi32, #tpu.memory_space<smem>>) -> (i32, i32, i32) {
    %c0_i32 = arith.constant 0 : i32
    %c0_i32_0 = arith.constant 0 : i32
    %c0_i32_1 = arith.constant 0 : i32
    return %arg0, %c0_i32, %c0_i32_0 : i32, i32, i32
  }
}

</mosaic_0001>

<bundles_post_ra>
// kernel: tpu_custom_call.1
= control target key start
LH: loop header
LB: loop body
LE: loop exit
PB: predicated region body
PF: predicated region fallthrough
CT: control target
= control target key end

     0   :  { %s1123_s0 = inlined_call_operand.<no memory space> [shape: s32[1], index: 0, kind: input, shape index: {}]   ;;  %s1124_s1 = inlined_call_operand.hbm [shape: f32[2,8,128], index: 1, kind: input, shape index: {}]   ;;  %s1125_s2 = inlined_call_operand.hbm [shape: f32[2,8,128], index: 2, kind: input, shape index: {}]   ;;  %s1126_s3 = inlined_call_operand.hbm [shape: f32[2,8,128], index: 3, kind: input, shape index: {}]   ;;  %s1127_s4 = inlined_call_operand.hbm [shape: f32[2,1,128], index: 4, kind: output, shape index: {0}]   ;;  %s1128_s5 = inlined_call_operand.hbm [shape: f32[2,1,128], index: 5, kind: output, shape index: {1}]  }
   0x1   :  { %1132 = sst [smem:[#allocation20_spill]] %s1125_s2 }
   0x2   :  { %11 = sst [smem:[#allocation3]] %s1123_s0 }
   0x3   :  { %12 = vsyncpa [#allocation5], 0 }
   0x4   :  { %14 = vsyncpa [#allocation5 + $0x1], 0 }
   0x5   :  { %15 = vsyncpa [#allocation8], 0 }
   0x6   :  { %17 = vsyncpa [#allocation8 + $0x1], 0 }
   0x7   :  { %18 = vsyncpa [#allocation6], 0 }
   0x8   :  { %20 = vsyncpa [#allocation6 + $0x1], 0 }
   0x9   :  { %21 = vsyncpa [#allocation12], 0 }
   0xa   :  { %23 = vsyncpa [#allocation12 + $0x1], 0  ;;  %s877_s20 = smov 0   ;;  %s879_s21 = smov 0  }
   0xb   :  { %s881_s22 = smov 0   ;;  %s883_s23 = smov 0  }
   0xc   :  { %s885_s24 = smov 0   ;;  %s887_s25 = smov 0  }
   0xd LB: > { %1133 = sst [smem:[#allocation17_spill]] %s832_s24  ;;  %s908_s0 = sadd.s32 4294967295, %s836_s25   ;;  %s836_s25 = sphi %s887_s25, %s29_s25   ;;  %s832_s24 = sphi %s885_s24, %s1147_s24   ;;  %s828_s23 = sphi %s883_s23, %s1146_s23   ;;  %s824_s22 = sphi %s881_s22, %s1150_s22   ;;  %s820_s21 = sphi %s879_s21, %s1149_s21   ;;  %s816_s20 = sphi %s877_s20, %s1148_s20  }
   0xe   : > { %s538_s26 = sadd.s32 4294967294, %s836_s25   ;;  %s41_s27 = sadd.s32 1, %s832_s24 }
   0xf   : > { %s50_s28 = sadd.s32 1, %s824_s22  ;;  %p43_p0 = scmp.ge.s32.totalorder %s41_s27, 2 }
  0x10   : > { %p57_p1 = scmp.ne.s32.totalorder %s824_s22, %s820_s21  ;;  %p58_p2 = scmp.eq.s32.totalorder %s836_s25, 0 }
  0x11   : > { %p63_p3 = scmp.ne.s32.totalorder %s820_s21, %s816_s20  ;;  %s1152_s27 = smov (%p43_p0, %s41_s27), 0 }
  0x12   : > { %1134 = sst [smem:[#allocation18_spill]] %s1152_s27  ;;  %p920_p4 = por %p58_p2, %p57_p1 }
  0x13   : > { %p64_p5 = scmp.eq.s32.totalorder %s908_s0, 0  ;;  %s45_s30 = ssub.s32 %s832_s24, %s1152_s27 }
  0x14   : > { %p143_p6 = scmp.eq.s32.totalorder %s908_s0, 1  ;;  %p48_p7 = scmp.eq.s32.totalorder %s45_s30, 0 }
  0x15   : > { %p928_p8 = por %p64_p5, %p63_p3  ;;  %p149_p10 = scmp.eq.s32.totalorder %s538_s26, 1 }
  0x16   : > { %p932_p9 = por %p143_p6, %p57_p1  ;;  %p583_p13 = scmp.lt.s32.totalorder %s836_s25, 2 }
  0x17   : > { %s937_s8 = scalar_select %p48_p7, %s824_s22, %s50_s28  }
  0x18   : > { %p939_p11 = por %p149_p10, %p63_p3  ;;  %s1129_s10 = sand.u32 1, %s824_s22  }
  0x19   : > { %1138 = sst [smem:[#allocation19_spill]] %s937_s8  ;;  %s948_s11 = sshll.u32 %s1129_s10, 3 }
  0x1a   : > { %s951_s12 = sshll.u32 %s832_s24, 7  ;;  %p955_p0 = pnand %p583_p13, %p920_p4 }
  0x1b   : > { %s214_s14 = sand.u32 1, %s836_s25   ;;  %s1141_s2 = sld [smem:[#allocation20_spill]] }
  0x1c   : > { %s218_s18 = scalar_lea.vmem [#allocation7], %s948_s11  ;;  %p547_p1 = scmp.ge.s32.totalorder %s836_s25, 1 }
  0x1d   : > { %s226_s19 = sshll.u32 %s218_s18, 4  ;;  %p250_p2 = scmp.lt.s32.totalorder %s836_s25, 3  ;;  %s227_s19 = int_to_ptr.vmem [resolvable:$true] %s226_s19 }
  0x1e   : > { %s967_s26 = scalar_lea.sflag [#allocation8], %s214_s14  ;;  %p640_p3 = pneg %p955_p0 }
  0x1f   : > { %s651_s28 = scalar_lea.vmem %s227_s19, 128  ;;  %s838_s29 = smov [#allocation7]  }
  0x20   : > { %p652_p4 = scmp.ne.s32.totalorder %s227_s19, %s651_s28  ;;  %s656_s30 = sshll.u32 %s838_s29, 4  ;;  %s657_s30 = int_to_ptr.vmem [resolvable:$false] %s656_s30 }
  0x21   : > { %s224_s17 = scalar_lea.hbm %s1141_s2, %s951_s12  ;;  %s658_s15 = scalar_lea.vmem %s657_s30, 256 }
  0x22   : > { %p654_p5 = pnand %p652_p4, %p640_p3  ;;  %p659_p7 = scmp.lt.s32.totalorder %s227_s19, %s657_s30 }
  0x23   : > { %p660_p10 = scmp.lt.s32.totalorder %s658_s15, %s651_s28 }
  0x24   : > { %p655_p6 = pneg %p654_p5 }
  0x25   : > { %p661_p13 = por %p660_p10, %p659_p7 }
  0x27   : > { %p662_p12 = pnand %p661_p13, %p655_p6 }
  0x29   : > { %665 = shalt.err (!%p662_p12)
}
  0x2a   : > { %572 = dma.hbm_to_vmem [thread:$0]  (!%p955_p0), %s224_s17, 128, %s227_s19, %s967_s26  }
  0x2b   : > { %p981_p4 = pnand %p547_p1, %p250_p2  ;;  %s205_s28 = scalar_lea.hbm %s1124_s1, %s951_s12 }
  0x2c   : > { %s199_s29 = scalar_lea.vmem [#allocation4], %s948_s11  ;;  %s243_s2 = scalar_lea.hbm %s1126_s3, %s951_s12 }
  0x2d   : > { %s207_s30 = sshll.u32 %s199_s29, 4  ;;  %s1143_s27 = sand.u32 1, %s824_s22   ;;  %s208_s30 = int_to_ptr.vmem [resolvable:$true] %s207_s30 }
  0x2e   : > { %s196_s24 = scalar_lea.sflag [#allocation5], %s1143_s27  ;;  %s679_s17 = scalar_lea.vmem %s208_s30, 128 }
  0x2f   : > { %p680_p12 = scmp.ne.s32.totalorder %s208_s30, %s679_s17  ;;  %s839_s19 = smov [#allocation4]  }
  0x30   : > { %s684_s8 = sshll.u32 %s839_s19, 4  ;;  %s685_s8 = int_to_ptr.vmem [resolvable:$false] %s684_s8 }
  0x31   : > { %p682_p1 = pnand %p680_p12, %p640_p3  ;;  %s686_s16 = scalar_lea.vmem %s685_s8, 256 }
  0x32   : > { %p687_p5 = scmp.lt.s32.totalorder %s208_s30, %s685_s8  ;;  %p688_p6 = scmp.lt.s32.totalorder %s686_s16, %s679_s17 }
  0x33   : > { %p683_p2 = pneg %p682_p1 }
  0x34   : > { %p689_p7 = por %p688_p6, %p687_p5 }
  0x36   : > { %p690_p10 = pnand %p689_p7, %p683_p2 }
  0x38   : > { %693 = shalt.err (!%p690_p10)
}
  0x39   : > { %569 = dma.hbm_to_vmem [thread:$0]  (!%p955_p0), %s205_s28, 128, %s208_s30, %s196_s24  }
  0x3a   : > { %s237_s27 = scalar_lea.vmem [#allocation9], %s948_s11  ;;  %s840_s29 = smov [#allocation9]  }
  0x3b   : > { %s245_s10 = sshll.u32 %s237_s27, 4  ;;  %s712_s8 = sshll.u32 %s840_s29, 4  ;;  %s246_s10 = int_to_ptr.vmem [resolvable:$true] %s245_s10  ;;  %s713_s8 = int_to_ptr.vmem [resolvable:$false] %s712_s8 }
  0x3c   : > { %s707_s18 = scalar_lea.vmem %s246_s10, 128  ;;  %s714_s15 = scalar_lea.vmem %s713_s8, 256 }
  0x3d   : > { %p708_p13 = scmp.ne.s32.totalorder %s246_s10, %s707_s18  ;;  %p715_p2 = scmp.lt.s32.totalorder %s246_s10, %s713_s8 }
  0x3e   : > { %p716_p5 = scmp.lt.s32.totalorder %s714_s15, %s707_s18 }
  0x3f   : > { %p710_p12 = pnand %p708_p13, %p640_p3 }
  0x40   : > { %p717_p6 = por %p716_p5, %p715_p2 }
  0x41   : > { %p711_p1 = pneg %p710_p12 }
  0x43   : > { %p718_p7 = pnand %p717_p6, %p711_p1 }
  0x45   : > { %721 = shalt.err (!%p718_p7)
}
  0x46   : > { %575 = dma.hbm_to_vmem [thread:$0]  (!%p955_p0), %s243_s2, 128, %s246_s10, %s967_s26  }
  0x47   : > { %254 = sbr.rel (%p981_p4) target bundleno = 167 (0xa7), region = 32  ;;  %s1016_s28 = sand.u32 (!%p981_p4), 1, %s820_s21  }
  0x48   : > { %s548_s30 = sshll.u32 (!%p981_p4), %s1016_s28, 3  ;;  %s257_s17 = scalar_lea.sflag (!%p981_p4), [#allocation5], %s1016_s28 }
  0x49   : > { %s260_s19 = scalar_lea.vmem (!%p981_p4), [#allocation4], %s548_s30 }
  0x4c   : > { %799 = dma.done.wait (%p928_p8), %s257_s17, 128  }
  0x4d   : > { %801 = vsyncadd (%p928_p8), %s257_s17, 4294967168  ;;  %s265_s2 = sand.u32 1, %s908_s0   ;;  %s269_s13 = scalar_lea.vmem [#allocation7], %s548_s30 }
  0x4e   : > { %s266_s12 = scalar_lea.sflag [#allocation8], %s265_s2 }
  0x4f   : > { %803 = dma.done.wait (%p928_p8), %s266_s12, 256  }
  0x50   : > { %805 = vsyncadd (%p928_p8), %s266_s12, 4294967040  ;;  %s1030_s26 = scalar_lea.vmem [#allocation10], %s1016_s28  ;;  %v841_v0 = vmov 0.0   ;;  %s1034_s14 = scalar_lea.vmem [#allocation11], %s1016_s28  ;;  %v322_v1 = vld [vmem:[%s260_s19] sm:$0xff]  ;;  %v323_v6 = vld [vmem:[%s269_s13] sm:$0xff] }
  0x51   : > { %320 = vst [vmem:[%s1030_s26] sm:$0x1] %v841_v0  ;;  %321 = vst [vmem:[%s1034_s14] sm:$0x1] %v841_v0  ;;  %v551_v2 = vmul.f32 -1.442695, %v322_v1  ;;  %s325_s0 = sld [smem:[#allocation3]]  ;;  %s278_s16 = scalar_lea.vmem [#allocation9], %s548_s30 }
  0x52   : > { %v324_v7 = vld [vmem:[%s278_s16] sm:$0xff]  ;;  %s552_s27 = sshll.u32 %s828_s23, 4  ;;  %s376_s10 = sshll.u32 %s1030_s26, 4  ;;  %s1047_s10 = int_to_ptr.vmem [resolvable:$true] %s376_s10 }
  0x53   : > { %634 = vpow2.f32 %v551_v2  ;;  %v338_v9 = vmul.f32 %v324_v7, %v323_v6  ;;  %s389_s18 = sshll.u32 %s1034_s14, 4  ;;  %s1045_s15 = scalar_lea.hbm %s1127_s4, %s552_s27  ;;  %s1054_s18 = int_to_ptr.vmem [resolvable:$true] %s389_s18 }
  0x54   : > { %s1052_s23 = scalar_lea.hbm %s1128_s5, %s552_s27  ;;  %s360_s30 = scalar_lea.sflag [#allocation6], %s1016_s28 }
  0x55   : > { %s722_s17 = scalar_lea.vmem %s1047_s10, 16  ;;  %s842_s19 = smov [#allocation10]  }
  0x56   : > { %p723_p8 = scmp.ne.s32.totalorder %s1047_s10, %s722_s17  ;;  %s726_s2 = sshll.u32 %s842_s19, 4  ;;  %s727_s2 = int_to_ptr.vmem [resolvable:$false] %s726_s2 }
  0x57   : > { %p326_p0 = scmp.ne.s32.totalorder %s325_s0, 0  ;;  %s728_s12 = scalar_lea.vmem %s727_s2, 32 }
  0x58   : > { %v339_v24 = vld [vmem:[%s1030_s26] sm:$0x1]  ;;  %p724_p3 = pnand %p723_p8, %p932_p9  ;;  %p729_p10 = scmp.lt.s32.totalorder %s1047_s10, %s727_s2 }
  0x59   : > { %s333_s6 = scalar_select %p326_p0, 1, 0  ;;  %v349_v25 = vld [vmem:[%s1034_s14] sm:$0x1] }
  0x5a   : > { %p725_p4 = pneg %p724_p3  ;;  %p730_p13 = scmp.lt.s32.totalorder %s728_s12, %s722_s17 }
  0x5b   : > { %v334_v5 = vstv %s333_s6 }
  0x5c   : > { %vm335_vm0 = vcmp.eq.s32.totalorder %v334_v5, 1  ;;  %p731_p12 = por %p730_p13, %p729_p10 }
  0x5e   : > { %p732_p1 = pnand %p731_p12, %p725_p4 }
  0x60   : > { %v635_v3 = vpop.eup %634 }
  0x61   : > { %v330_v4 = vadd.f32 1.0, %v635_v3 }
  0x63   : > { %636 = vrcp.f32 %v330_v4 }
  0x70   : > { %v637_v8 = vpop.eup %636 }
  0x71   : > { %v336_v10 = vsel %vm335_vm0, %v637_v8, %v322_v1 }
  0x72   : > { %v337_v11 = vmul.f32 %v336_v10, %v324_v7 }
  0x74   : > { %v340_v12 = vmul.f32 %v337_v11, %v323_v6  ;;  %v350_v13 = vadd.f32 %v338_v9, %v337_v11 }
  0x76   : > { %v341_v14 = vrot.slane %v340_v12, 4  ;;  %v351_v15 = vrot.slane %v350_v13, 4 }
  0x78   : > { %v342_v16 = vadd.f32 %v341_v14, %v340_v12  ;;  %v352_v17 = vadd.f32 %v351_v15, %v350_v13 }
  0x7a   : > { %v343_v18 = vrot.slane %v342_v16, 2  ;;  %v353_v19 = vrot.slane %v352_v17, 2 }
  0x7c   : > { %v344_v20 = vadd.f32 %v343_v18, %v342_v16  ;;  %v354_v21 = vadd.f32 %v353_v19, %v352_v17 }
  0x7e   : > { %v345_v22 = vrot.slane %v344_v20, 1  ;;  %v355_v23 = vrot.slane %v354_v21, 1 }
  0x80   : > { %v346_v26 = vadd.f32 %v345_v22, %v344_v20  ;;  %v356_v27 = vadd.f32 %v355_v23, %v354_v21 }
  0x82   : > { %v347_v28 = vadd.f32 %v346_v26, %v339_v24  ;;  %v357_v29 = vadd.f32 %v356_v27, %v349_v25 }
  0x84   : > { %348 = vst [vmem:[%s1030_s26] sm:$0x1] %v347_v28  ;;  %358 = vst [vmem:[%s1034_s14] sm:$0x1] %v357_v29 }
  0x85   : > { %735 = shalt.err (!%p732_p1)
}
  0x86   : > { %s736_s13 = scalar_lea.hbm %s1045_s15, 16  ;;  %s740_s0 = scalar_lea.hbm %s1127_s4, 32 }
  0x87   : > { %p737_p2 = scmp.ne.s32.totalorder %s1045_s15, %s736_s13  ;;  %p741_p7 = scmp.lt.s32.totalorder %s1045_s15, %s1127_s4 }
  0x88   : > { %p742_p0 = scmp.lt.s32.totalorder %s740_s0, %s736_s13 }
  0x89   : > { %p738_p5 = pnand %p737_p2, %p932_p9 }
  0x8a   : > { %p743_p8 = por %p742_p0, %p741_p7 }
  0x8b   : > { %p739_p6 = pneg %p738_p5 }
  0x8d   : > { %p744_p3 = pnand %p743_p8, %p739_p6 }
  0x8f   : > { %747 = shalt.err (!%p744_p3)
}
  0x90   : > { %562 = dma.vmem_to_hbm [thread:$0]  (%p932_p9), %s1047_s10, 16, %s1045_s15, %s360_s30  }
  0x91   : > { %s364_s27 = scalar_lea.sflag [#allocation12], %s1016_s28  ;;  %s748_s29 = scalar_lea.vmem %s1054_s18, 16 }
  0x92   : > { %p749_p4 = scmp.ne.s32.totalorder %s1054_s18, %s748_s29  ;;  %s843_s8 = smov [#allocation11]  }
  0x93   : > { %s752_s24 = sshll.u32 %s843_s8, 4  ;;  %s753_s24 = int_to_ptr.vmem [resolvable:$false] %s752_s24 }
  0x94   : > { %p750_p10 = pnand %p749_p4, %p932_p9  ;;  %s754_s11 = scalar_lea.vmem %s753_s24, 32 }
  0x95   : > { %p755_p12 = scmp.lt.s32.totalorder %s1054_s18, %s753_s24  ;;  %p756_p1 = scmp.lt.s32.totalorder %s754_s11, %s748_s29 }
  0x96   : > { %p751_p13 = pneg %p750_p10 }
  0x97   : > { %p757_p2 = por %p756_p1, %p755_p12 }
  0x99   : > { %p758_p5 = pnand %p757_p2, %p751_p13 }
  0x9b   : > { %761 = shalt.err (!%p758_p5)
}
  0x9c   : > { %s762_s10 = scalar_lea.hbm %s1052_s23, 16  ;;  %s766_s30 = scalar_lea.hbm %s1128_s5, 32 }
  0x9d   : > { %p763_p6 = scmp.ne.s32.totalorder %s1052_s23, %s762_s10  ;;  %p767_p8 = scmp.lt.s32.totalorder %s1052_s23, %s1128_s5 }
  0x9e   : > { %p768_p3 = scmp.lt.s32.totalorder %s766_s30, %s762_s10 }
  0x9f   : > { %p764_p7 = pnand %p763_p6, %p932_p9 }
  0xa0   : > { %p769_p4 = por %p768_p3, %p767_p8 }
  0xa1   : > { %p765_p0 = pneg %p764_p7 }
  0xa3   : > { %p770_p10 = pnand %p769_p4, %p765_p0 }
  0xa5   : > { %773 = shalt.err (!%p770_p10)
}
  0xa6   : > { %563 = dma.vmem_to_hbm [thread:$0]  (%p932_p9), %s1054_s18, 16, %s1052_s23, %s364_s27  }
  0xa7 PF: > { %s401_s2 = sand.u32 1, %s816_s20   ;;  %p1144_p13 = scmp.ge.s32.totalorder %s836_s25, 2 }
  0xa8   : > { %s402_s12 = scalar_lea.sflag [#allocation6], %s401_s2 }
  0xa9   : > { %p577_p12 = pnand %p1144_p13, %p939_p11 }
  0xab   : > { %p578_p1 = pneg %p577_p12 }
  0xad   : > { %807 = dma.done.wait (%p578_p1), %s402_s12, 16  }
  0xae   : > { %809 = vsyncadd (%p578_p1), %s402_s12, 4294967280  ;;  %s410_s13 = scalar_lea.sflag [#allocation12], %s401_s2 }
  0xaf   : > { %811 = dma.done.wait (%p578_p1), %s410_s13, 16  }
  0xb0   : > { %813 = vsyncadd (%p578_p1), %s410_s13, 4294967280  ;;  %s29_s25 = sadd.s32 1, %s836_s25   ;;  %s1145_s7 = sld [smem:[#allocation19_spill]] }
  0xb1   : > { %p26_p2 = scmp.ge.s32.totalorder %s29_s25, 4   ;;  %s1146_s23 = sld [smem:[#allocation17_spill]] }
  0xb2   : > { %s1147_s24 = sld [smem:[#allocation18_spill]]  ;;  %s1148_s20 = smov %s820_s21 }
  0xb3   : > { %s1149_s21 = smov %s824_s22  ;;  %28 = sbr.rel (!%p26_p2) target bundleno = 13 (0xd), region = 122 }
  0xb6   : > { %s1150_s22 = smov %s1145_s7 }
  0xb8   :  { %414 = vsyncpa [#allocation5], 1 }
  0xb9   :  { %416 = vsyncpa [#allocation5 + $0x1], 1 }
  0xba   :  { %417 = vsyncpa [#allocation8], 1 }
  0xbb   :  { %419 = vsyncpa [#allocation8 + $0x1], 1 }
  0xbc   :  { %420 = vsyncpa [#allocation6], 1 }
  0xbd   :  { %422 = vsyncpa [#allocation6 + $0x1], 1 }
  0xbe   :  { %423 = vsyncpa [#allocation12], 1 }
  0xbf   :  { %425 = vsyncpa [#allocation12 + $0x1], 1 }

</bundles_post_ra>
